<compile_context>
chip_gen: v7x
topology: tpu7x:2x2x1
jax: 0.10.0
libtpu: 0.0.40
codegen_flags: <defaults>
</compile_context>

<pallas_src>
import functools

import jax
import jax.numpy as jnp
import numpy as np
from jax.experimental import pallas as pl
from jax.experimental.pallas import tpu as pltpu


# ---------------------------------------------------------------------------
# Kernel A: gather centers[target] via manual row DMAs, compute the MSE sum
# and the per-sample scaled update rows  (alpha/(count+1e-6)) * diff,
# all in a single grid step over the whole batch.
# ---------------------------------------------------------------------------
def _gather_loss_kernel(tgt_sref,            # (B,)  int32  scalar-prefetch (SMEM)
                        feat_ref,            # (B,D) f32    features
                        inv_ref,             # (B,1) f32    alpha/(count+1e-6)
                        centers_hbm,         # (C,D) f32    centers (HBM / ANY)
                        scaled_ref,          # (B,D) f32    out: scaled update rows
                        loss_ref,            # (1,1) f32    out: MSE loss
                        cb_ref,              # (B,D) f32    scratch: gathered rows
                        sem,                 # DMA semaphore (1,)
                        *, inv_bd):
    b = feat_ref.shape[0]

    # Gather centers[target[i]] rows: start all B row DMAs, then wait for all.
    # O(B*D) HBM traffic, independent of the number of classes.
    @pl.loop(0, b)
    def _start(i):
        pltpu.make_async_copy(
            centers_hbm.at[pl.ds(tgt_sref[i], 1)],
            cb_ref.at[pl.ds(i, 1)],
            sem.at[0],
        ).start()

    @pl.loop(0, b)
    def _wait(i):
        pltpu.make_async_copy(
            centers_hbm.at[pl.ds(tgt_sref[i], 1)],
            cb_ref.at[pl.ds(i, 1)],
            sem.at[0],
        ).wait()

    diff = cb_ref[...] - feat_ref[...]                       # centers_batch - features
    loss_ref[...] = jnp.sum(diff * diff, keepdims=True) * inv_bd   # MSE 'mean'
    scaled_ref[...] = diff * inv_ref[...]                    # alpha*diff/(count+eps)


# ---------------------------------------------------------------------------
# Kernel B: scatter  new_centers[tile] = centers[tile] - one_hot.T @ scaled
# only for the class tiles actually touched by `target` (touched_sref).
# ---------------------------------------------------------------------------
def _scatter_kernel(touched_sref,            # (n_steps,) int32 touched tile ids (SMEM)
                    tvec_ref,                # (B,1)  int32 labels
                    scaled_ref,              # (B,D)  f32   scaled update rows
                    centers_ref,             # (tc,D) f32   centers tile (aliased)
                    out_ref,                 # (tc,D) f32   updated centers tile
                    *, tc):
    tile_id = touched_sref[pl.program_id(0)]
    tgt = tvec_ref[...]                                      # (B, 1)
    b = tgt.shape[0]
    class_ids = jax.lax.broadcasted_iota(jnp.int32, (b, tc), 1) + tile_id * tc
    one_hot = (tgt == class_ids).astype(jnp.float32)         # (B, tc)
    delta = jax.lax.dot_general(                             # (tc, D) = one_hot.T @ scaled
        one_hot, scaled_ref[...],
        dimension_numbers=(((0,), (0,)), ((), ())),
        preferred_element_type=jnp.float32)
    out_ref[...] = centers_ref[...] - delta


def _pick_class_tile(C, D, B):
    """Pick the Kernel-B class tile and VMEM limit for the current TPU."""
    try:
        vmem_bytes = int(pltpu.get_tpu_info().vmem_capacity_bytes)
    except Exception:
        vmem_bytes = 64 * 1024 * 1024                      # conservative (v7x)
    if vmem_bytes >= 100 * 1024 * 1024:                    # v5e / v6e: 128 MiB VMEM
        gen_limit, tc_cap = 96 * 1024 * 1024, 1024
    else:                                                  # v7x: 64 MiB VMEM
        gen_limit, tc_cap = 48 * 1024 * 1024, 256
    # Double-buffered centers in + out tiles (4*tc*D*4 bytes) plus the resident
    # scaled/labels inputs must fit with headroom.
    # TODO(synk): add a D grid axis for very large feat_dim on v7x instead of
    # only shrinking tc.
    budget = gen_limit - 4 * B * D * 4 - (2 << 20)
    tc_fit = max(8, (budget // (4 * D * 4)) // 8 * 8)
    tc = min(tc_cap, tc_fit)
    if C <= tc:
        tc = C                                             # single full-size tile
    needed = 4 * tc * D * 4 + 4 * B * D * 4 + (8 << 20)
    vmem_limit = max(32 * 1024 * 1024, min(gen_limit, needed))
    return tc, vmem_limit


def center_loss_forward(features, target, centers, alpha=1.0):
    """features: (B, D) f32, target: (B,) int, centers: (C, D) f32.
    Returns (center_loss scalar, updated_centers (C, D))."""
    B, D = features.shape
    C, D2 = centers.shape
    assert D == D2
    features = features.astype(jnp.float32)
    centers = centers.astype(jnp.float32)
    target1d = target.reshape(B).astype(jnp.int32)
    target2d = target1d.reshape(B, 1)

    # appear_times hoisted out of the kernel (trivial BxB compare in XLA);
    # alpha is folded in so the kernel body is a single fused multiply.
    counts = jnp.sum((target1d[:, None] == target1d[None, :]).astype(jnp.float32),
                     axis=1)
    inv = (alpha / (counts + 1e-6)).reshape(B, 1).astype(jnp.float32)

    # ---- Kernel A: whole batch in one grid step ------------------------------
    kernel_a = functools.partial(_gather_loss_kernel, inv_bd=1.0 / (B * D))
    scaled, loss_mat = pl.pallas_call(
        kernel_a,
        out_shape=(
            jax.ShapeDtypeStruct((B, D), jnp.float32),
            jax.ShapeDtypeStruct((1, 1), jnp.float32),
        ),
        grid_spec=pltpu.PrefetchScalarGridSpec(
            num_scalar_prefetch=1,                 # target1d -> SMEM
            grid=(1,),
            in_specs=[
                pl.BlockSpec((B, D), lambda i, tgt: (0, 0)),   # features
                pl.BlockSpec((B, 1), lambda i, tgt: (0, 0)),   # alpha/(count+eps)
                pl.BlockSpec(memory_space=pl.ANY),             # centers stay in HBM
            ],
            out_specs=(
                pl.BlockSpec((B, D), lambda i, tgt: (0, 0)),   # scaled rows
                pl.BlockSpec((1, 1), lambda i, tgt: (0, 0)),   # MSE loss
            ),
            scratch_shapes=[
                pltpu.VMEM((B, D), jnp.float32),               # gathered center rows
                pltpu.SemaphoreType.DMA((1,)),
            ],
        ),
        compiler_params=pltpu.CompilerParams(
            dimension_semantics=("arbitrary",)),
    )(target1d, features, inv, centers)

    # ---- Kernel B: scatter update over ONLY the touched class tiles ----------
    tc, vmem_limit = _pick_class_tile(C, D, B)
    n_class_tiles = pl.cdiv(C, tc)
    n_steps = min(B, n_class_tiles)                 # static bound on touched tiles

    # Unique touched tile ids, padded (at the end) with the LAST touched tile.
    tile_of = target1d // tc                                      # (B,)
    sorted_tiles = jnp.sort(tile_of)
    is_new = jnp.concatenate(
        [jnp.ones((1,), dtype=bool), sorted_tiles[1:] != sorted_tiles[:-1]])
    rank = jnp.cumsum(is_new.astype(jnp.int32)) - 1               # unique rank
    touched = jnp.full((n_steps,), sorted_tiles[-1], dtype=jnp.int32)
    touched = touched.at[rank].set(sorted_tiles)

    kernel_b = functools.partial(_scatter_kernel, tc=tc)

    def _scatter_call(centers_alias_idx):
        return pl.pallas_call(
            kernel_b,
            out_shape=jax.ShapeDtypeStruct((C, D), jnp.float32),
            grid_spec=pltpu.PrefetchScalarGridSpec(
                num_scalar_prefetch=1,               # touched tile ids -> SMEM
                grid=(n_steps,),
                in_specs=[
                    pl.BlockSpec((B, 1), lambda c, t: (0, 0)),       # labels
                    pl.BlockSpec((B, D), lambda c, t: (0, 0)),       # scaled rows
                    pl.BlockSpec((tc, D), lambda c, t: (t[c], 0)),   # centers tile
                ],
                out_specs=pl.BlockSpec((tc, D), lambda c, t: (t[c], 0)),
            ),
            # Donate centers: untouched tiles keep their values, no (C,D) copy.
            input_output_aliases={centers_alias_idx: 0},
            compiler_params=pltpu.CompilerParams(
                # "arbitrary": padded tail revisits the last tile; it must not
                # be split across TensorCores.
                dimension_semantics=("arbitrary",),
                vmem_limit_bytes=vmem_limit),
        )(touched, target2d, scaled, centers)

    try:
        # input_output_aliases indices count the scalar-prefetch operand too:
        # (touched=0, labels=1, scaled=2, centers=3).
        new_centers = _scatter_call(3)
    except Exception:
        # Fallback for the convention that excludes scalar-prefetch operands.
        new_centers = _scatter_call(2)

    return loss_mat[0, 0], new_centers


if __name__ == "__main__":
    num_classes, feat_dim, batch = 10, 32, 8
    alpha = 0.5

    key = jax.random.PRNGKey(0)
    kf, kt, kc = jax.random.split(key, 3)
    features = jax.random.normal(kf, (batch, feat_dim), dtype=jnp.float32)
    target = jax.random.randint(kt, (batch,), 0, num_classes, dtype=jnp.int32)
    # Module __init__ uses zeros; use small random centers here so the gather
    # path is actually exercised by the correctness check.
    centers = 0.1 * jax.random.normal(kc, (num_classes, feat_dim), dtype=jnp.float32)

    # Pure-JAX reference of the same semantics (the PyTorch per-sample loop
    # accumulates updates for duplicate labels, matching .at[].add).
    cb = centers[target]
    ref_loss = jnp.mean((features - cb) ** 2)
    diff = cb - features
    counts = jnp.sum(target[:, None] == target[None, :], axis=1).astype(jnp.float32)
    scaled_ref = alpha * diff / (counts[:, None] + 1e-6)
    ref_centers = centers.at[target].add(-scaled_ref)

    loss, new_centers = center_loss_forward(features, target, centers, alpha=alpha)
    loss = jax.block_until_ready(loss)
    new_centers = jax.block_until_ready(new_centers)

    assert np.allclose(np.asarray(loss), np.asarray(ref_loss), rtol=1e-5, atol=1e-5)
    assert np.allclose(np.asarray(new_centers), np.asarray(ref_centers),
                       rtol=1e-5, atol=1e-5)
    print("KERNEL_OK")
</pallas_src>

<mosaic_0001>
module attributes {stable_mosaic.version = 11 : i64} {
  func.func @_gather_loss_kernel(%arg0: i32, %arg1: memref<8xi32, #tpu.memory_space<smem>>, %arg2: memref<8x32xf32, #tpu.memory_space<vmem>>, %arg3: memref<8x1xf32, #tpu.memory_space<vmem>>, %arg4: memref<10x32xf32, #tpu.memory_space<any>>, %arg5: memref<8x32xf32, #tpu.memory_space<vmem>>, %arg6: memref<1x1xf32, #tpu.memory_space<vmem>>, %arg7: memref<8x32xf32, #tpu.memory_space<vmem>>, %arg8: memref<1x!tpu.dma_semaphore, #tpu.memory_space<semaphore_mem>>) attributes {dimension_semantics = [#tpu.dimension_semantics<arbitrary>], iteration_bounds = array<i64: 1>, scalar_prefetch = 1 : i64, scratch_operands = 2 : i64, tpu.core_type = #tpu.core_type<tc>, window_params = [{pipeline_mode = #tpu.pipeline_mode<synchronous>, transform_indices = @transform_0, window_bounds = array<i64: 8, 32>}, {pipeline_mode = #tpu.pipeline_mode<synchronous>, transform_indices = @transform_1, window_bounds = array<i64: 8, 1>}, {}, {pipeline_mode = #tpu.pipeline_mode<synchronous>, transform_indices = @transform_3, window_bounds = array<i64: 8, 32>}, {pipeline_mode = #tpu.pipeline_mode<synchronous>, transform_indices = @transform_4, window_bounds = array<i64: 1, 1>}]} {
    %c0_i32 = arith.constant 0 : i32
    %c8_i32 = arith.constant 8 : i32
    %0 = arith.addi %c0_i32, %c8_i32 : i32
    %c1_i32 = arith.constant 1 : i32
    scf.for %arg9 = %c0_i32 to %0 step %c1_i32  : i32 {
      %c1_i32_15 = arith.constant 1 : i32
      %18 = arith.muli %arg9, %c1_i32_15 : i32
      %c0_i32_16 = arith.constant 0 : i32
      %19 = arith.addi %c0_i32_16, %18 : i32
      %20 = arith.index_cast %19 : i32 to index
      %21 = memref.load %arg1[%20] : memref<8xi32, #tpu.memory_space<smem>>
      %c0_i32_17 = arith.constant 0 : i32
      %c0_i32_18 = arith.constant 0 : i32
      %22 = tpu.memref_slice %arg4[%21, %c0_i32_18] : memref<10x32xf32, #tpu.memory_space<any>> -> memref<1x32xf32, #tpu.memory_space<any>>
      %c0_i32_19 = arith.constant 0 : i32
      %23 = tpu.memref_slice %arg7[%19, %c0_i32_19] : memref<8x32xf32, #tpu.memory_space<vmem>> -> memref<1x32xf32, #tpu.memory_space<vmem>>
      %24 = tpu.memref_slice %arg8[%c0_i32_17] : memref<1x!tpu.dma_semaphore, #tpu.memory_space<semaphore_mem>> -> memref<1x!tpu.dma_semaphore, #tpu.memory_space<semaphore_mem>>
      %25 = tpu.memref_squeeze %24 : memref<1x!tpu.dma_semaphore, #tpu.memory_space<semaphore_mem>> -> memref<!tpu.dma_semaphore, #tpu.memory_space<semaphore_mem>>
      tpu.enqueue_dma source(%22 : memref<1x32xf32, #tpu.memory_space<any>>) target(%23 : memref<1x32xf32, #tpu.memory_space<vmem>>) target_semaphore(%25 : memref<!tpu.dma_semaphore, #tpu.memory_space<semaphore_mem>>)
    }
    %c8_i32_0 = arith.constant 8 : i32
    %c0_i32_1 = arith.constant 0 : i32
    %c8_i32_2 = arith.constant 8 : i32
    %1 = arith.addi %c0_i32_1, %c8_i32_2 : i32
    %c1_i32_3 = arith.constant 1 : i32
    scf.for %arg9 = %c0_i32_1 to %1 step %c1_i32_3  : i32 {
      %c1_i32_15 = arith.constant 1 : i32
      %18 = arith.muli %arg9, %c1_i32_15 : i32
      %c0_i32_16 = arith.constant 0 : i32
      %19 = arith.addi %c0_i32_16, %18 : i32
      %20 = arith.index_cast %19 : i32 to index
      %21 = memref.load %arg1[%20] : memref<8xi32, #tpu.memory_space<smem>>
      %c0_i32_17 = arith.constant 0 : i32
      %c0_i32_18 = arith.constant 0 : i32
      %22 = tpu.memref_slice %arg4[%21, %c0_i32_18] : memref<10x32xf32, #tpu.memory_space<any>> -> memref<1x32xf32, #tpu.memory_space<any>>
      %c0_i32_19 = arith.constant 0 : i32
      %23 = tpu.memref_slice %arg7[%19, %c0_i32_19] : memref<8x32xf32, #tpu.memory_space<vmem>> -> memref<1x32xf32, #tpu.memory_space<vmem>>
      %24 = tpu.memref_slice %arg8[%c0_i32_17] : memref<1x!tpu.dma_semaphore, #tpu.memory_space<semaphore_mem>> -> memref<1x!tpu.dma_semaphore, #tpu.memory_space<semaphore_mem>>
      %25 = tpu.memref_squeeze %24 : memref<1x!tpu.dma_semaphore, #tpu.memory_space<semaphore_mem>> -> memref<!tpu.dma_semaphore, #tpu.memory_space<semaphore_mem>>
      tpu.wait_dma2 semaphore(%25 : memref<!tpu.dma_semaphore, #tpu.memory_space<semaphore_mem>>) src(%22 : memref<1x32xf32, #tpu.memory_space<any>>) dst(%23 : memref<1x32xf32, #tpu.memory_space<vmem>>)
    }
    %c8_i32_4 = arith.constant 8 : i32
    %c0 = arith.constant 0 : index
    %c0_5 = arith.constant 0 : index
    %2 = vector.load %arg7[%c0, %c0_5] : memref<8x32xf32, #tpu.memory_space<vmem>>, vector<8x32xf32>
    %c0_6 = arith.constant 0 : index
    %c0_7 = arith.constant 0 : index
    %3 = vector.load %arg2[%c0_6, %c0_7] : memref<8x32xf32, #tpu.memory_space<vmem>>, vector<8x32xf32>
    %4 = arith.subf %2, %3 : vector<8x32xf32>
    %5 = arith.mulf %4, %4 : vector<8x32xf32>
    %6 = vector.shape_cast %5 : vector<8x32xf32> to vector<1x8x32xf32>
    %cst = arith.constant dense<0.000000e+00> : vector<1xf32>
    %7 = vector.multi_reduction <add>, %6, %cst [1, 2] : vector<1x8x32xf32> to vector<1xf32>
    %8 = vector.shape_cast %7 : vector<1xf32> to vector<1x1x1xf32>
    %9 = vector.extract %8[0, 0, 0] : f32 from vector<1x1x1xf32>
    %10 = vector.broadcast %9 : f32 to vector<1x1xf32>
    %cst_8 = arith.constant 3.906250e-03 : f32
    %11 = vector.broadcast %cst_8 : f32 to vector<1x1xf32>
    %12 = arith.mulf %10, %11 : vector<1x1xf32>
    %c0_9 = arith.constant 0 : index
    %c0_10 = arith.constant 0 : index
    %13 = vector.load %arg6[%c0_9, %c0_10] : memref<1x1xf32, #tpu.memory_space<vmem>>, vector<1x1xf32>
    tpu.vector_store %arg6[%c0_9, %c0_10], %12 {strides = array<i32>} : memref<1x1xf32, #tpu.memory_space<vmem>>, vector<1x1xf32>,
    %c0_11 = arith.constant 0 : index
    %c0_12 = arith.constant 0 : index
    %14 = vector.load %arg3[%c0_11, %c0_12] : memref<8x1xf32, #tpu.memory_space<vmem>>, vector<8x1xf32>
    %15 = vector.broadcast %14 : vector<8x1xf32> to vector<8x32xf32>
    %16 = arith.mulf %4, %15 : vector<8x32xf32>
    %c0_13 = arith.constant 0 : index
    %c0_14 = arith.constant 0 : index
    %17 = vector.load %arg5[%c0_13, %c0_14] : memref<8x32xf32, #tpu.memory_space<vmem>>, vector<8x32xf32>
    tpu.vector_store %arg5[%c0_13, %c0_14], %16 {strides = array<i32>} : memref<8x32xf32, #tpu.memory_space<vmem>>, vector<8x32xf32>,
    return
  }
  func.func @transform_0(%arg0: i32, %arg1: memref<8xi32, #tpu.memory_space<smem>>) -> (i32, i32) {
    %c0_i32 = arith.constant 0 : i32
    %c0_i32_0 = arith.constant 0 : i32
    %c0_i32_1 = arith.constant 0 : i32
    return %c0_i32, %c0_i32_0 : i32, i32
  }
  func.func @transform_1(%arg0: i32, %arg1: memref<8xi32, #tpu.memory_space<smem>>) -> (i32, i32) {
    %c0_i32 = arith.constant 0 : i32
    %c0_i32_0 = arith.constant 0 : i32
    %c0_i32_1 = arith.constant 0 : i32
    return %c0_i32, %c0_i32_0 : i32, i32
  }
  func.func @transform_3(%arg0: i32, %arg1: memref<8xi32, #tpu.memory_space<smem>>) -> (i32, i32) {
    %c0_i32 = arith.constant 0 : i32
    %c0_i32_0 = arith.constant 0 : i32
    %c0_i32_1 = arith.constant 0 : i32
    return %c0_i32, %c0_i32_0 : i32, i32
  }
  func.func @transform_4(%arg0: i32, %arg1: memref<8xi32, #tpu.memory_space<smem>>) -> (i32, i32) {
    %c0_i32 = arith.constant 0 : i32
    %c0_i32_0 = arith.constant 0 : i32
    %c0_i32_1 = arith.constant 0 : i32
    return %c0_i32, %c0_i32_0 : i32, i32
  }
}

</mosaic_0001>

<bundles_post_ra>
// kernel: tpu_custom_call.1
= control target key start
LH: loop header
LB: loop body
LE: loop exit
PB: predicated region body
PF: predicated region fallthrough
CT: control target
= control target key end

     0   :  { %s393_s0 = inlined_call_operand.vmem [shape: s32[8], index: 0, kind: input, shape index: {}]   ;;  %s394_s1 = inlined_call_operand.hbm [shape: f32[8,32], index: 1, kind: input, shape index: {}]   ;;  %s395_s2 = inlined_call_operand.vmem [shape: f32[8,1], index: 2, kind: input, shape index: {}]   ;;  %s396_s3 = inlined_call_operand.vmem [shape: f32[10,32], index: 3, kind: input, shape index: {}]   ;;  %s397_s4 = inlined_call_operand.hbm [shape: f32[8,32], index: 4, kind: output, shape index: {0}]   ;;  %s398_s5 = inlined_call_operand.hbm [shape: f32[1,1], index: 5, kind: output, shape index: {1}]  }
   0x1   :  { %s11_s20 = sshll.u32 %s393_s0, 4  ;;  %s12_s20 = int_to_ptr.vmem [resolvable:$true] %s11_s20 }
   0x2   :  { %s207_s21 = scalar_lea.vmem %s12_s20, 16  ;;  %p212_p1 = scmp.lt.s32.totalorder %s12_s20, %s12_s20 }
   0x3   :  { %p208_p0 = scmp.ne.s32.totalorder %s12_s20, %s207_s21  ;;  %p213_p2 = scmp.lt.s32.totalorder %s207_s21, %s207_s21 }
   0x5   :  { %p214_p3 = por %p213_p2, %p212_p1 }
   0x7   :  { %p215_p4 = pnand %p214_p3, %p208_p0 }
   0x9   :  { %218 = shalt.err (!%p215_p4)  }
   0xa   :  { %s311_s22 = smov [#allocation5]  }
   0xb   :  { %14 = dma.vmem_to_smem %s12_s20, 16, %s311_s22, [#allocation4] }
   0xc   :  { %293 = dma.done.wait [#allocation4], 16 }
   0xd   :  { %294 = vsyncadd [#allocation4], 4294967280 }
   0xe   :  { %16 = sfence }
   0xf   :  { %17 = vsyncpa [#allocation7], 0 }
  0x10   :  { %18 = vsyncpa [#allocation8], 0 }
  0x11   :  { %19 = vsyncpa [#allocation11], 0  ;;  %s312_s23 = smov [#allocation6]   ;;  %s219_s26 = scalar_lea.hbm %s394_s1, 128 }
  0x12   :  { %s26_s24 = sshll.u32 %s312_s23, 4  ;;  %p220_p5 = scmp.ne.s32.totalorder %s394_s1, %s219_s26  ;;  %s27_s24 = int_to_ptr.vmem [resolvable:$true] %s26_s24 }
  0x13   :  { %p223_p6 = scmp.lt.u32.totalorder %s219_s26, %s394_s1 }
  0x15   :  { %p225_p7 = pnand %p223_p6, %p220_p5 }
  0x17   :  { %228 = shalt.err (!%p225_p7)
}
  0x18   :  { %s229_s6 = scalar_lea.vmem %s27_s24, 128  ;;  %p234_p9 = scmp.lt.s32.totalorder %s27_s24, %s27_s24 }
  0x19   :  { %p230_p8 = scmp.ne.s32.totalorder %s27_s24, %s229_s6  ;;  %p235_p10 = scmp.lt.s32.totalorder %s229_s6, %s229_s6 }
  0x1b   :  { %p236_p11 = por %p235_p10, %p234_p9 }
  0x1d   :  { %p237_p12 = pnand %p236_p11, %p230_p8 }
  0x1f   :  { %240 = shalt.err (!%p237_p12)
}
  0x20   :  { %29 = dma.hbm_to_vmem [thread:$0]  %s394_s1, 128, %s27_s24, [#allocation7]  }
  0x21   :  { %295 = dma.done.wait [#allocation7], 128  }
  0x22   :  { %296 = vsyncadd [#allocation7], 4294967168  ;;  %s303_s9 = smov 0  }
  0x23 LB: > { %s41_s10 = sld [smem:[#allocation5 + %s305_s9]]  ;;  %s43_s14 = scalar_lea.vmem [#allocation2], %s305_s9  ;;  %s305_s9 = sphi %s303_s9, %s40_s9  }
  0x29   : > { %s42_s13 = scalar_lea.vmem %s396_s3, %s41_s10 }
  0x2a   : > { %v61_v0 = vld [vmem:[%s42_s13] sm:$0x1] }
  0x2b   : > { %62 = vst [vmem:[%s43_s14] sm:$0x1] %v61_v0 }
  0x2c   : > { %87 = vsyncadd [#allocation3], 16  ;;  %s40_s9 = sadd.s32 1, %s305_s9  }
  0x2d   : > { %p37_p13 = scmp.ge.s32.totalorder %s40_s9, 8  }
  0x2e   :  { %s307_s1 = smov (%p37_p13), 0  }
  0x2f   :  { %39 = sbr.rel (!%p37_p13) target bundleno = 35 (0x23), region = 96 }
  0x36 LB: > { %297 = dma.done.wait [#allocation3], 16  ;;  %s309_s1 = sphi %s307_s1, %s93_s1  }
  0x37   : > { %298 = vsyncadd [#allocation3], 4294967280  ;;  %s93_s1 = sadd.s32 1, %s309_s1  }
  0x38   : > { %p90_p0 = scmp.ge.s32.totalorder %s93_s1, 8  }
  0x39   :  { %v98_v1 = vld [vmem:[#allocation2] sm:$0xff] (%p90_p0)  ;;  %v99_v2 = vld [vmem:[#allocation6] sm:$0xff] (%p90_p0)  ;;  %v313_v4 = vmov (%p90_p0), 0   ;;  %vm102_vm0 = vcmask (%p90_p0), 261120   ;;  %s314_s16 = smov (%p90_p0), [#allocation9]  }
  0x3a   :  { %92 = sbr.rel (!%p90_p0) target bundleno = 54 (0x36), region = 107  ;;  %v100_v3 = vsub.f32 (%p90_p0), %v98_v1, %v99_v2  ;;  %206 = vset.pattern.permute.xlu0 (%p90_p0), %v313_v4  ;;  %v117_v7 = vld [vmem:[%s395_s2] sm:$0xff] (%p90_p0)  ;;  %s131_s17 = sshll.u32 (%p90_p0), %s314_s16, 4  ;;  %s132_s17 = int_to_ptr.vmem [resolvable:$true] %s131_s17 }
  0x3b   :  { %s241_s18 = scalar_lea.vmem (%p90_p0), %s132_s17, 128  ;;  %p246_p2 = scmp.lt.s32.totalorder (%p90_p0), %s132_s17, %s132_s17 }
  0x3c   :  { %v101_v5 = vmul.f32 (%p90_p0), %v100_v3, %v100_v3  ;;  %p242_p1 = scmp.ne.s32.totalorder (%p90_p0), %s132_s17, %s241_s18  ;;  %p247_p3 = scmp.lt.s32.totalorder (%p90_p0), %s241_s18, %s241_s18 }
  0x3e   :  { %v103_v6 = vsel (%p90_p0), %vm102_vm0, %v101_v5, 0.0  ;;  %p248_p4 = por (%p90_p0), %p247_p3, %p246_p2 }
  0x3f   :  { %104 = vadd.xlane.f32.xlu0 (%p90_p0), %v103_v6 }
  0x40   :  { %p249_p5 = pnand (%p90_p0), %p248_p4, %p242_p1 }
  0x55   :  { %120 = vperm.xlu0 %206, %v117_v7  }
  0xcc   :  { %v105_v8 = vpop.xlane.xlu0 %104 }
  0xcd   :  { %v106_v9 = vrot.slane %v105_v8, 4 }
  0xcf   :  { %v107_v10 = vadd.f32 %v106_v9, %v105_v8 }
  0xd1   :  { %v108_v11 = vrot.slane %v107_v10, 2 }
  0xd3   :  { %v109_v12 = vadd.f32 %v108_v11, %v107_v10 }
  0xd4   :  { %v121_v13 = vpop.permute.xlu0 %120 }
  0xd5   :  { %v110_v14 = vrot.slane %v109_v12, 1  ;;  %v123_v15 = vmul.f32 %v121_v13, %v100_v3 }
  0xd7   :  { %v111_v16 = vadd.f32 %v110_v14, %v109_v12  ;;  %124 = vst.msk [vmem:[#allocation9] sm:$0xff] %vm102_vm0, %v123_v15 }
  0xd8   :  { %252 = shalt.err (!%p249_p5)
}
  0xd9   :  { %s253_s20 = scalar_lea.hbm %s397_s4, 128 }
  0xda   :  { %p254_p6 = scmp.ne.s32.totalorder %s397_s4, %s253_s20  ;;  %p257_p7 = scmp.lt.u32.totalorder %s253_s20, %s397_s4 }
  0xdc   :  { %p259_p8 = pnand %p257_p7, %p254_p6 }
  0xde   :  { %262 = shalt.err (!%p259_p8)
}
  0xdf   :  { %134 = dma.vmem_to_hbm [thread:$0]  %s132_s17, 128, %s397_s4, [#allocation8]   ;;  %183 = vpush %v111_v16  ;;  %vm115_vm1 = vcmask 0  }
  0xe0   :  { %s315_s26 = smov [#allocation10]  }
  0xe1   :  { %s141_s27 = sshll.u32 %s315_s26, 4  ;;  %s142_s27 = int_to_ptr.vmem [resolvable:$true] %s141_s27 }
  0xe2   :  { %s263_s29 = scalar_lea.vmem %s142_s27, 16  ;;  %s267_s30 = scalar_lea.vmem %s142_s27, 32 }
  0xe3   :  { %p264_p9 = scmp.ne.s32.totalorder %s142_s27, %s263_s29  ;;  %p268_p10 = scmp.lt.s32.totalorder %s142_s27, %s142_s27 }
  0xe4   :  { %p269_p11 = scmp.lt.s32.totalorder %s267_s30, %s263_s29 }
  0xe6   :  { %p270_p12 = por %p269_p11, %p268_p10 }
  0xe8   :  { %p271_p13 = pnand %p270_p12, %p264_p9 }
 0x110   :  { %s184_s28 = spop %183 }
 0x111   :  { %v113_v17 = vstv %s184_s28 }
 0x112   :  { %v114_v18 = vmul.f32 0.00390625, %v113_v17 }
 0x114   :  { %116 = vst.msk [vmem:[#allocation10] sm:$0x1] %vm115_vm1, %v114_v18 }
 0x115   :  { %274 = shalt.err (!%p271_p13)
}
 0x116   :  { %s275_s4 = scalar_lea.hbm %s398_s5, 16 }
 0x117   :  { %p276_p0 = scmp.ne.s32.totalorder %s398_s5, %s275_s4  ;;  %p279_p1 = scmp.lt.u32.totalorder %s275_s4, %s398_s5 }
 0x119   :  { %p281_p2 = pnand %p279_p1, %p276_p0 }
 0x11b   :  { %284 = shalt.err (!%p281_p2)
}
 0x11c   :  { %144 = dma.vmem_to_hbm [thread:$0]  %s142_s27, 16, %s398_s5, [#allocation11]  }
 0x11d   :  { %299 = dma.done.wait [#allocation8], 128  }
 0x11e   :  { %300 = vsyncadd [#allocation8], 4294967168 }
 0x11f   :  { %301 = dma.done.wait [#allocation11], 16  }
 0x120   :  { %302 = vsyncadd [#allocation11], 4294967280 }
 0x121   :  { %151 = vsyncpa [#allocation7], 1 }
 0x122   :  { %152 = vsyncpa [#allocation8], 1 }
 0x123   :  { %153 = vsyncpa [#allocation11], 1 }
 0x124   :  { %154 = vsyncmov [#allocation3] }
 0x127   :  { %s155_s14 = vpop.sfrf %154 }
 0x128   :  { %p182_p3 = scmp.ne.s32.totalorder %s155_s14, 0 }
 0x12a   :  { %159 = shalt.err (%p182_p3)  }

</bundles_post_ra>
